<compile_context>
chip_gen: v7x
topology: tpu7x:2x2x1
jax: 0.10.0
libtpu: 0.0.40
codegen_flags: <defaults>
</compile_context>

<pallas_src>
import jax
import jax.numpy as jnp
from jax.experimental import pallas as pl
from jax.experimental.pallas import tpu as pltpu


KP = 32  # 3*3*3 = 27 im2col taps, zero-padded to 32 for aligned MXU contraction.


# ----------------------------- Pallas kernel bodies -----------------------------

def _backbone_feat(cols_b, w1, b1, w2, b2):
    """cols_b:(HW,KP) bf16 -> z:(HW,D) f32. conv1+ReLU then 1x1+ReLU, kept in VMEM."""
    y = jnp.dot(cols_b, w1, preferred_element_type=jnp.float32) + b1
    y = jnp.maximum(y, 0.0).astype(jnp.bfloat16)
    z = jnp.dot(y, w2, preferred_element_type=jnp.float32) + b2
    return jnp.maximum(z, 0.0)                                    # (HW, D) f32


def _masked_pool(z_f32, mask_row):
    """z:(HW,D) f32, mask_row:(1,HW) f32 -> (1,D). MXU dot + EUP approx reciprocal."""
    s = jnp.sum(mask_row, axis=-1, keepdims=True)                 # (1, 1)
    inv = pl.reciprocal(s + 1e-6, approx=True)
    return jnp.dot(mask_row * inv, z_f32, preferred_element_type=jnp.float32)


def _train_kernel(cols_ref, mask_ref, w1_ref, b1_ref, w2_ref, b2_ref,
                  we_ref, be_ref, pooled_ref, emb_ref):
    # One train image per grid step; feature map stays in VMEM (never written to HBM).
    z = _backbone_feat(cols_ref[0], w1_ref[...], b1_ref[...],
                       w2_ref[...], b2_ref[...])                  # (HW, D) f32
    pooled = _masked_pool(z, mask_ref[0])                         # (1, D)
    emb = jnp.dot(pooled.astype(jnp.bfloat16), we_ref[...],
                  preferred_element_type=jnp.float32) + be_ref[...]
    pooled_ref[0] = pooled
    emb_ref[0] = emb


def _test_kernel(cols_ref, mask_ref, whb_ref, bh_ref, w1_ref, b1_ref, w2_ref, b2_ref,
                 we_ref, be_ref, emb_ref, packed_ref):
    z = _backbone_feat(cols_ref[0], w1_ref[...], b1_ref[...],
                       w2_ref[...], b2_ref[...])                  # (HW, D) f32
    pooled = _masked_pool(z, mask_ref[0])                         # (1, D)
    emb = jnp.dot(pooled.astype(jnp.bfloat16), we_ref[...],
                  preferred_element_type=jnp.float32) + be_ref[...]
    emb_ref[0] = emb
    # Fused classifier-correlation + bbox regression: a single MXU matmul against the
    # packed per-sequence weights [filter | bbreg_w | zeros]; lane-dense (HW, 128) store.
    packed = jnp.dot(z.astype(jnp.bfloat16), whb_ref[0],
                     preferred_element_type=jnp.float32) + bh_ref[...]
    packed_ref[0] = packed


# ----------------------------- pallas_call wrappers -----------------------------
# NOTE: at real ToMP dims (C ~ 256-1024, HW ~ thousands) the (HW, D) block and weights
# would need K-tiling with an f32 VMEM accumulator and an explicit vmem_limit_bytes
# (v7x has only 64 MiB VMEM).  At the sizes here everything fits with huge headroom.

def run_train_kernel(cols, mask, p):
    B, HW, Kp = cols.shape
    D = p["head_w"].shape[1]
    E = p["emb_w"].shape[1]
    w1, b1, w2, b2, we, be = (p[k] for k in
                              ("conv1_w", "conv1_b", "head_w", "head_b", "emb_w", "emb_b"))
    pooled, emb = pl.pallas_call(
        _train_kernel,
        out_shape=(jax.ShapeDtypeStruct((B, 1, D), jnp.float32),
                   jax.ShapeDtypeStruct((B, 1, E), jnp.float32)),
        grid=(B,),
        in_specs=[
            pl.BlockSpec((1, HW, Kp), lambda b: (b, 0, 0)),
            pl.BlockSpec((1, 1, HW), lambda b: (b, 0, 0)),
            pl.BlockSpec(w1.shape, lambda b: (0, 0)),
            pl.BlockSpec(b1.shape, lambda b: (0, 0)),
            pl.BlockSpec(w2.shape, lambda b: (0, 0)),
            pl.BlockSpec(b2.shape, lambda b: (0, 0)),
            pl.BlockSpec(we.shape, lambda b: (0, 0)),
            pl.BlockSpec(be.shape, lambda b: (0, 0)),
        ],
        out_specs=(pl.BlockSpec((1, 1, D), lambda b: (b, 0, 0)),
                   pl.BlockSpec((1, 1, E), lambda b: (b, 0, 0))),
        compiler_params=pltpu.CompilerParams(dimension_semantics=("parallel",)),
    )(cols, mask, w1, b1, w2, b2, we, be)
    return pooled[:, 0, :], emb[:, 0, :]


def run_test_kernel(cols, mask, whb, bh, p):
    B, HW, Kp = cols.shape
    D = p["head_w"].shape[1]
    E = p["emb_w"].shape[1]
    w1, b1, w2, b2, we, be = (p[k] for k in
                              ("conv1_w", "conv1_b", "head_w", "head_b", "emb_w", "emb_b"))
    emb, packed = pl.pallas_call(
        _test_kernel,
        out_shape=(jax.ShapeDtypeStruct((B, 1, E), jnp.float32),
                   jax.ShapeDtypeStruct((B, HW, 128), jnp.float32)),
        grid=(B,),
        in_specs=[
            pl.BlockSpec((1, HW, Kp), lambda b: (b, 0, 0)),
            pl.BlockSpec((1, 1, HW), lambda b: (b, 0, 0)),
            pl.BlockSpec((1, D, 128), lambda b: (b, 0, 0)),
            pl.BlockSpec(bh.shape, lambda b: (0, 0)),
            pl.BlockSpec(w1.shape, lambda b: (0, 0)),
            pl.BlockSpec(b1.shape, lambda b: (0, 0)),
            pl.BlockSpec(w2.shape, lambda b: (0, 0)),
            pl.BlockSpec(b2.shape, lambda b: (0, 0)),
            pl.BlockSpec(we.shape, lambda b: (0, 0)),
            pl.BlockSpec(be.shape, lambda b: (0, 0)),
        ],
        out_specs=(pl.BlockSpec((1, 1, E), lambda b: (b, 0, 0)),
                   pl.BlockSpec((1, HW, 128), lambda b: (b, 0, 0))),
        compiler_params=pltpu.CompilerParams(dimension_semantics=("parallel",)),
    )(cols, mask, whb, bh, w1, b1, w2, b2, we, be)
    return emb[:, 0, :], packed


# ----------------------------- plain-JAX glue -----------------------------

def im2col_3x3_s2(x_nhwc):
    """3x3 patches, stride 2, pad 1.  (B,H,W,C) -> (B,H//2,W//2,9*C)."""
    B, H, W, C = x_nhwc.shape
    Ho, Wo = H // 2, W // 2
    xp = jnp.pad(x_nhwc, ((0, 0), (1, 1), (1, 1), (0, 0)))
    cols = []
    for dy in range(3):
        for dx in range(3):
            cols.append(xp[:, dy:dy + 2 * Ho - 1:2, dx:dx + 2 * Wo - 1:2, :])
    return jnp.concatenate(cols, axis=-1)


def bb_to_mask(bb, feat_h, feat_w, stride):
    """bb:(B,4) (x,y,w,h) in image pixels -> (B, feat_h*feat_w) binary mask."""
    B = bb.shape[0]
    cy = ((jnp.arange(feat_h, dtype=jnp.float32) + 0.5) * stride)[None, :, None]
    cx = ((jnp.arange(feat_w, dtype=jnp.float32) + 0.5) * stride)[None, None, :]
    x0 = bb[:, 0][:, None, None]
    y0 = bb[:, 1][:, None, None]
    x1 = x0 + bb[:, 2][:, None, None]
    y1 = y0 + bb[:, 3][:, None, None]
    inside = (cx >= x0) & (cx < x1) & (cy >= y0) & (cy < y1)
    return inside.astype(jnp.float32).reshape(B, feat_h * feat_w)


def init_params(key, c_in=3, c_bb=32, d_head=32, e_emb=32):
    ks = jax.random.split(key, 4)
    return {
        "conv1_w": jax.random.normal(ks[0], (3 * 3 * c_in, c_bb), jnp.float32) * 0.1,
        "conv1_b": jnp.zeros((c_bb,), jnp.float32),
        "head_w": jax.random.normal(ks[1], (c_bb, d_head), jnp.float32) * 0.1,
        "head_b": jnp.zeros((d_head,), jnp.float32),
        "emb_w": jax.random.normal(ks[2], (d_head, e_emb), jnp.float32) * 0.1,
        "emb_b": jnp.zeros((e_emb,), jnp.float32),
        "bbreg_w": jax.random.normal(ks[3], (d_head, 4), jnp.float32) * 0.1,
        "bbreg_b": jnp.zeros((4,), jnp.float32),
    }


def _prep_params(params):
    """bf16 weights for the MXU, f32 (1,N) biases for the epilogue; pad conv1 K to KP."""
    w1 = jnp.pad(params["conv1_w"], ((0, KP - params["conv1_w"].shape[0]), (0, 0)))
    return {
        "conv1_w": w1.astype(jnp.bfloat16),
        "conv1_b": params["conv1_b"].reshape(1, -1).astype(jnp.float32),
        "head_w": params["head_w"].astype(jnp.bfloat16),
        "head_b": params["head_b"].reshape(1, -1).astype(jnp.float32),
        "emb_w": params["emb_w"].astype(jnp.bfloat16),
        "emb_b": params["emb_b"].reshape(1, -1).astype(jnp.float32),
    }


def ssl_tompnet_forward(params, train_imgs, test_imgs, train_bb, test_bb):
    assert train_imgs.ndim == 5 and test_imgs.ndim == 5, "Expect 5 dimensional inputs"
    n_train, num_sequences = train_imgs.shape[:2]
    n_test = test_imgs.shape[0]
    H, W = train_imgs.shape[-2:]
    stride = 2
    Hf, Wf = H // stride, W // stride
    HW = Hf * Wf
    D = params["head_w"].shape[1]
    E = params["emb_w"].shape[1]

    p = _prep_params(params)

    def make_cols(imgs):  # (N, seq, 3, H, W) -> (N*seq, HW, KP) bf16
        x = jnp.transpose(imgs.reshape(-1, 3, H, W), (0, 2, 3, 1))     # NCHW -> NHWC
        cols = im2col_3x3_s2(x).reshape(-1, HW, 3 * 3 * 3)
        cols = jnp.pad(cols, ((0, 0), (0, 0), (0, KP - cols.shape[-1])))
        return cols.astype(jnp.bfloat16)

    train_cols = make_cols(train_imgs)
    test_cols = make_cols(test_imgs)
    train_mask = bb_to_mask(train_bb.reshape(-1, 4), Hf, Wf, stride).reshape(-1, 1, HW)
    test_mask = bb_to_mask(test_bb.reshape(-1, 4), Hf, Wf, stride).reshape(-1, 1, HW)

    # --- train path: backbone + masked pool + target embedding (one fused kernel) ---
    train_pooled, train_emb = run_train_kernel(train_cols, train_mask, p)
    train_target_emb = train_emb.reshape(n_train, num_sequences, E)

    # --- head filter: per-sequence mean of the (shared) masked-pooled train features ---
    train_filter = train_pooled.reshape(n_train, num_sequences, D).mean(axis=0)  # (seq, D)
    B_te = n_test * num_sequences
    filt = jnp.broadcast_to(train_filter[None], (n_test, num_sequences, D)).reshape(B_te, D)

    # Packed per-batch head weights: [filter | bbreg_w | zero-pad] -> lane-dense (D, 128).
    pad = 128 - 1 - 4
    whb = jnp.concatenate(
        [filt[:, :, None],
         jnp.broadcast_to(params["bbreg_w"][None], (B_te, D, 4)),
         jnp.zeros((B_te, D, pad), jnp.float32)], axis=-1).astype(jnp.bfloat16)
    bh = jnp.concatenate(
        [jnp.zeros((1,), jnp.float32), params["bbreg_b"],
         jnp.zeros((pad,), jnp.float32)]).reshape(1, 128)

    # --- test path: backbone + pool + embedding + fused corr/bbox (one fused kernel) ---
    test_emb, packed = run_test_kernel(test_cols, test_mask, whb, bh, p)
    test_target_emb = test_emb.reshape(n_test, num_sequences, E)
    target_emb = [train_target_emb, test_target_emb]

    test_scores = packed[:, :, 0].reshape(n_test, num_sequences, Hf, Wf)
    bbox_preds = packed[:, :, 1:5].reshape(n_test, num_sequences, Hf, Wf, 4)
    bbox_preds = jnp.transpose(bbox_preds, (0, 1, 4, 2, 3))        # (n_test, seq, 4, Hf, Wf)

    return test_scores, bbox_preds, target_emb


# ----------------------------- main -----------------------------

if __name__ == "__main__":
    key = jax.random.PRNGKey(0)
    k1, k2, k3, k4, kp = jax.random.split(key, 5)
    n_train, n_test, seq, H, W = 2, 2, 2, 16, 16

    train_imgs = jax.random.normal(k1, (n_train, seq, 3, H, W), jnp.float32)
    test_imgs = jax.random.normal(k2, (n_test, seq, 3, H, W), jnp.float32)

    def rand_bb(k, lead_shape):
        kxy, kwh = jax.random.split(k)
        xy = jax.random.uniform(kxy, lead_shape + (2,), minval=2.0, maxval=6.0)
        wh = jax.random.uniform(kwh, lead_shape + (2,), minval=4.0, maxval=8.0)
        return jnp.concatenate([xy, wh], axis=-1)

    train_bb = rand_bb(k3, (n_train, seq))
    test_bb = rand_bb(k4, (n_test, seq))

    params = init_params(kp)

    forward = jax.jit(ssl_tompnet_forward)
    test_scores, bbox_preds, target_emb = forward(
        params, train_imgs, test_imgs, train_bb, test_bb)
    jax.block_until_ready((test_scores, bbox_preds, target_emb))

    assert test_scores.shape == (n_test, seq, 8, 8)
    assert bbox_preds.shape == (n_test, seq, 4, 8, 8)
    assert target_emb[0].shape == (n_train, seq, 32)
    assert target_emb[1].shape == (n_test, seq, 32)
    assert bool(jnp.all(jnp.isfinite(test_scores)))
    assert bool(jnp.all(jnp.isfinite(bbox_preds)))
    print("KERNEL_OK")
</pallas_src>

<mosaic_0001>
module attributes {stable_mosaic.version = 11 : i64} {
  func.func @_train_kernel(%arg0: i32, %arg1: memref<1x64x32xbf16, #tpu.memory_space<vmem>>, %arg2: memref<1x1x64xf32, #tpu.memory_space<vmem>>, %arg3: memref<32x32xbf16, #tpu.memory_space<vmem>>, %arg4: memref<1x32xf32, #tpu.memory_space<vmem>>, %arg5: memref<32x32xbf16, #tpu.memory_space<vmem>>, %arg6: memref<1x32xf32, #tpu.memory_space<vmem>>, %arg7: memref<32x32xbf16, #tpu.memory_space<vmem>>, %arg8: memref<1x32xf32, #tpu.memory_space<vmem>>, %arg9: memref<1x1x32xf32, #tpu.memory_space<vmem>>, %arg10: memref<1x1x32xf32, #tpu.memory_space<vmem>>) attributes {dimension_semantics = [#tpu.dimension_semantics<parallel>], iteration_bounds = array<i64: 4>, scalar_prefetch = 0 : i64, scratch_operands = 0 : i64, tpu.core_type = #tpu.core_type<tc>, window_params = [{transform_indices = @transform_0, window_bounds = array<i64: 1, 64, 32>}, {transform_indices = @transform_1, window_bounds = array<i64: 1, 1, 64>}, {pipeline_mode = #tpu.pipeline_mode<synchronous>, transform_indices = @transform_2, window_bounds = array<i64: 32, 32>}, {pipeline_mode = #tpu.pipeline_mode<synchronous>, transform_indices = @transform_3, window_bounds = array<i64: 1, 32>}, {pipeline_mode = #tpu.pipeline_mode<synchronous>, transform_indices = @transform_4, window_bounds = array<i64: 32, 32>}, {pipeline_mode = #tpu.pipeline_mode<synchronous>, transform_indices = @transform_5, window_bounds = array<i64: 1, 32>}, {pipeline_mode = #tpu.pipeline_mode<synchronous>, transform_indices = @transform_6, window_bounds = array<i64: 32, 32>}, {pipeline_mode = #tpu.pipeline_mode<synchronous>, transform_indices = @transform_7, window_bounds = array<i64: 1, 32>}, {transform_indices = @transform_8, window_bounds = array<i64: 1, 1, 32>}, {transform_indices = @transform_9, window_bounds = array<i64: 1, 1, 32>}]} {
    %c0 = arith.constant 0 : index
    %c0_0 = arith.constant 0 : index
    %c0_1 = arith.constant 0 : index
    %0 = vector.load %arg1[%c0, %c0_0, %c0_1] : memref<1x64x32xbf16, #tpu.memory_space<vmem>>, vector<1x64x32xbf16>
    %1 = vector.shape_cast %0 : vector<1x64x32xbf16> to vector<64x32xbf16>
    %c0_2 = arith.constant 0 : index
    %c0_3 = arith.constant 0 : index
    %2 = vector.load %arg3[%c0_2, %c0_3] : memref<32x32xbf16, #tpu.memory_space<vmem>>, vector<32x32xbf16>
    %c0_4 = arith.constant 0 : index
    %c0_5 = arith.constant 0 : index
    %3 = vector.load %arg4[%c0_4, %c0_5] : memref<1x32xf32, #tpu.memory_space<vmem>>, vector<1x32xf32>
    %c0_6 = arith.constant 0 : index
    %c0_7 = arith.constant 0 : index
    %4 = vector.load %arg5[%c0_6, %c0_7] : memref<32x32xbf16, #tpu.memory_space<vmem>>, vector<32x32xbf16>
    %c0_8 = arith.constant 0 : index
    %c0_9 = arith.constant 0 : index
    %5 = vector.load %arg6[%c0_8, %c0_9] : memref<1x32xf32, #tpu.memory_space<vmem>>, vector<1x32xf32>
    %cst = arith.constant dense<0.000000e+00> : vector<64x32xf32>
    %6 = tpu.matmul %1, %2, %cst {dimension_numbers = #tpu.dot_dimension_numbers<[1], [0], [0], [1], [0, 0, 1, 1], [], []>} : vector<64x32xbf16>, vector<32x32xbf16>, vector<64x32xf32> -> vector<64x32xf32>
    %7 = vector.broadcast %3 : vector<1x32xf32> to vector<64x32xf32>
    %8 = arith.addf %6, %7 : vector<64x32xf32>
    %cst_10 = arith.constant 0.000000e+00 : f32
    %9 = vector.broadcast %cst_10 : f32 to vector<64x32xf32>
    %10 = arith.maximumf %8, %9 : vector<64x32xf32>
    %11 = arith.truncf %10 : vector<64x32xf32> to vector<64x32xbf16>
    %cst_11 = arith.constant dense<0.000000e+00> : vector<64x32xf32>
    %12 = tpu.matmul %11, %4, %cst_11 {dimension_numbers = #tpu.dot_dimension_numbers<[1], [0], [0], [1], [0, 0, 1, 1], [], []>} : vector<64x32xbf16>, vector<32x32xbf16>, vector<64x32xf32> -> vector<64x32xf32>
    %13 = vector.broadcast %5 : vector<1x32xf32> to vector<64x32xf32>
    %14 = arith.addf %12, %13 : vector<64x32xf32>
    %cst_12 = arith.constant 0.000000e+00 : f32
    %15 = vector.broadcast %cst_12 : f32 to vector<64x32xf32>
    %16 = arith.maximumf %14, %15 : vector<64x32xf32>
    %c0_13 = arith.constant 0 : index
    %c0_14 = arith.constant 0 : index
    %c0_15 = arith.constant 0 : index
    %17 = vector.load %arg2[%c0_13, %c0_14, %c0_15] : memref<1x1x64xf32, #tpu.memory_space<vmem>>, vector<1x1x64xf32>
    %18 = vector.shape_cast %17 : vector<1x1x64xf32> to vector<1x64xf32>
    %cst_16 = arith.constant dense<0.000000e+00> : vector<1xf32>
    %19 = vector.multi_reduction <add>, %18, %cst_16 [1] : vector<1x64xf32> to vector<1xf32>
    %20 = vector.shape_cast %19 : vector<1xf32> to vector<1x1xf32>
    %cst_17 = arith.constant 9.99999997E-7 : f32
    %21 = vector.broadcast %cst_17 : f32 to vector<1x1xf32>
    %22 = arith.addf %20, %21 : vector<1x1xf32>
    %23 = tpu.reciprocal %22 {approx = true} : vector<1x1xf32> -> vector<1x1xf32>
    %24 = vector.broadcast %23 : vector<1x1xf32> to vector<1x64xf32>
    %25 = arith.mulf %18, %24 : vector<1x64xf32>
    %cst_18 = arith.constant dense<0.000000e+00> : vector<1x32xf32>
    %26 = tpu.matmul %25, %16, %cst_18 {dimension_numbers = #tpu.dot_dimension_numbers<[1], [0], [0], [1], [0, 0, 1, 1], [], []>} : vector<1x64xf32>, vector<64x32xf32>, vector<1x32xf32> -> vector<1x32xf32>
    %27 = arith.truncf %26 : vector<1x32xf32> to vector<1x32xbf16>
    %c0_19 = arith.constant 0 : index
    %c0_20 = arith.constant 0 : index
    %28 = vector.load %arg7[%c0_19, %c0_20] : memref<32x32xbf16, #tpu.memory_space<vmem>>, vector<32x32xbf16>
    %cst_21 = arith.constant dense<0.000000e+00> : vector<1x32xf32>
    %29 = tpu.matmul %27, %28, %cst_21 {dimension_numbers = #tpu.dot_dimension_numbers<[1], [0], [0], [1], [0, 0, 1, 1], [], []>} : vector<1x32xbf16>, vector<32x32xbf16>, vector<1x32xf32> -> vector<1x32xf32>
    %c0_22 = arith.constant 0 : index
    %c0_23 = arith.constant 0 : index
    %30 = vector.load %arg8[%c0_22, %c0_23] : memref<1x32xf32, #tpu.memory_space<vmem>>, vector<1x32xf32>
    %31 = arith.addf %29, %30 : vector<1x32xf32>
    %c0_24 = arith.constant 0 : index
    %c0_25 = arith.constant 0 : index
    %c0_26 = arith.constant 0 : index
    %32 = vector.load %arg9[%c0_24, %c0_25, %c0_26] : memref<1x1x32xf32, #tpu.memory_space<vmem>>, vector<1x1x32xf32>
    %33 = vector.shape_cast %32 : vector<1x1x32xf32> to vector<1x32xf32>
    %34 = vector.shape_cast %26 : vector<1x32xf32> to vector<1x1x32xf32>
    tpu.vector_store %arg9[%c0_24, %c0_25, %c0_26], %34 {strides = array<i32>} : memref<1x1x32xf32, #tpu.memory_space<vmem>>, vector<1x1x32xf32>,
    %c0_27 = arith.constant 0 : index
    %c0_28 = arith.constant 0 : index
    %c0_29 = arith.constant 0 : index
    %35 = vector.load %arg10[%c0_27, %c0_28, %c0_29] : memref<1x1x32xf32, #tpu.memory_space<vmem>>, vector<1x1x32xf32>
    %36 = vector.shape_cast %35 : vector<1x1x32xf32> to vector<1x32xf32>
    %37 = vector.shape_cast %31 : vector<1x32xf32> to vector<1x1x32xf32>
    tpu.vector_store %arg10[%c0_27, %c0_28, %c0_29], %37 {strides = array<i32>} : memref<1x1x32xf32, #tpu.memory_space<vmem>>, vector<1x1x32xf32>,
    return
  }
  func.func @transform_0(%arg0: i32) -> (i32, i32, i32) {
    %c0_i32 = arith.constant 0 : i32
    %c0_i32_0 = arith.constant 0 : i32
    %c0_i32_1 = arith.constant 0 : i32
    return %arg0, %c0_i32, %c0_i32_0 : i32, i32, i32
  }
  func.func @transform_1(%arg0: i32) -> (i32, i32, i32) {
    %c0_i32 = arith.constant 0 : i32
    %c0_i32_0 = arith.constant 0 : i32
    %c0_i32_1 = arith.constant 0 : i32
    return %arg0, %c0_i32, %c0_i32_0 : i32, i32, i32
  }
  func.func @transform_2(%arg0: i32) -> (i32, i32) {
    %c0_i32 = arith.constant 0 : i32
    %c0_i32_0 = arith.constant 0 : i32
    %c0_i32_1 = arith.constant 0 : i32
    return %c0_i32, %c0_i32_0 : i32, i32
  }
  func.func @transform_3(%arg0: i32) -> (i32, i32) {
    %c0_i32 = arith.constant 0 : i32
    %c0_i32_0 = arith.constant 0 : i32
    %c0_i32_1 = arith.constant 0 : i32
    return %c0_i32, %c0_i32_0 : i32, i32
  }
  func.func @transform_4(%arg0: i32) -> (i32, i32) {
    %c0_i32 = arith.constant 0 : i32
    %c0_i32_0 = arith.constant 0 : i32
    %c0_i32_1 = arith.constant 0 : i32
    return %c0_i32, %c0_i32_0 : i32, i32
  }
  func.func @transform_5(%arg0: i32) -> (i32, i32) {
    %c0_i32 = arith.constant 0 : i32
    %c0_i32_0 = arith.constant 0 : i32
    %c0_i32_1 = arith.constant 0 : i32
    return %c0_i32, %c0_i32_0 : i32, i32
  }
  func.func @transform_6(%arg0: i32) -> (i32, i32) {
    %c0_i32 = arith.constant 0 : i32
    %c0_i32_0 = arith.constant 0 : i32
    %c0_i32_1 = arith.constant 0 : i32
    return %c0_i32, %c0_i32_0 : i32, i32
  }
  func.func @transform_7(%arg0: i32) -> (i32, i32) {
    %c0_i32 = arith.constant 0 : i32
    %c0_i32_0 = arith.constant 0 : i32
    %c0_i32_1 = arith.constant 0 : i32
    return %c0_i32, %c0_i32_0 : i32, i32
  }
  func.func @transform_8(%arg0: i32) -> (i32, i32, i32) {
    %c0_i32 = arith.constant 0 : i32
    %c0_i32_0 = arith.constant 0 : i32
    %c0_i32_1 = arith.constant 0 : i32
    return %arg0, %c0_i32, %c0_i32_0 : i32, i32, i32
  }
  func.func @transform_9(%arg0: i32) -> (i32, i32, i32) {
    %c0_i32 = arith.constant 0 : i32
    %c0_i32_0 = arith.constant 0 : i32
    %c0_i32_1 = arith.constant 0 : i32
    return %arg0, %c0_i32, %c0_i32_0 : i32, i32, i32
  }
}

module attributes {stable_mosaic.version = 11 : i64} {
  func.func @_test_kernel(%arg0: i32, %arg1: memref<1x64x32xbf16, #tpu.memory_space<vmem>>, %arg2: memref<1x1x64xf32, #tpu.memory_space<vmem>>, %arg3: memref<1x32x128xbf16, #tpu.memory_space<vmem>>, %arg4: memref<1x128xf32, #tpu.memory_space<vmem>>, %arg5: memref<32x32xbf16, #tpu.memory_space<vmem>>, %arg6: memref<1x32xf32, #tpu.memory_space<vmem>>, %arg7: memref<32x32xbf16, #tpu.memory_space<vmem>>, %arg8: memref<1x32xf32, #tpu.memory_space<vmem>>, %arg9: memref<32x32xbf16, #tpu.memory_space<vmem>>, %arg10: memref<1x32xf32, #tpu.memory_space<vmem>>, %arg11: memref<1x1x32xf32, #tpu.memory_space<vmem>>, %arg12: memref<1x64x128xf32, #tpu.memory_space<vmem>>) attributes {dimension_semantics = [#tpu.dimension_semantics<parallel>], iteration_bounds = array<i64: 4>, scalar_prefetch = 0 : i64, scratch_operands = 0 : i64, tpu.core_type = #tpu.core_type<tc>, window_params = [{transform_indices = @transform_0, window_bounds = array<i64: 1, 64, 32>}, {transform_indices = @transform_1, window_bounds = array<i64: 1, 1, 64>}, {transform_indices = @transform_2, window_bounds = array<i64: 1, 32, 128>}, {pipeline_mode = #tpu.pipeline_mode<synchronous>, transform_indices = @transform_3, window_bounds = array<i64: 1, 128>}, {pipeline_mode = #tpu.pipeline_mode<synchronous>, transform_indices = @transform_4, window_bounds = array<i64: 32, 32>}, {pipeline_mode = #tpu.pipeline_mode<synchronous>, transform_indices = @transform_5, window_bounds = array<i64: 1, 32>}, {pipeline_mode = #tpu.pipeline_mode<synchronous>, transform_indices = @transform_6, window_bounds = array<i64: 32, 32>}, {pipeline_mode = #tpu.pipeline_mode<synchronous>, transform_indices = @transform_7, window_bounds = array<i64: 1, 32>}, {pipeline_mode = #tpu.pipeline_mode<synchronous>, transform_indices = @transform_8, window_bounds = array<i64: 32, 32>}, {pipeline_mode = #tpu.pipeline_mode<synchronous>, transform_indices = @transform_9, window_bounds = array<i64: 1, 32>}, {transform_indices = @transform_10, window_bounds = array<i64: 1, 1, 32>}, {transform_indices = @transform_11, window_bounds = array<i64: 1, 64, 128>}]} {
    %c0 = arith.constant 0 : index
    %c0_0 = arith.constant 0 : index
    %c0_1 = arith.constant 0 : index
    %0 = vector.load %arg1[%c0, %c0_0, %c0_1] : memref<1x64x32xbf16, #tpu.memory_space<vmem>>, vector<1x64x32xbf16>
    %1 = vector.shape_cast %0 : vector<1x64x32xbf16> to vector<64x32xbf16>
    %c0_2 = arith.constant 0 : index
    %c0_3 = arith.constant 0 : index
    %2 = vector.load %arg5[%c0_2, %c0_3] : memref<32x32xbf16, #tpu.memory_space<vmem>>, vector<32x32xbf16>
    %c0_4 = arith.constant 0 : index
    %c0_5 = arith.constant 0 : index
    %3 = vector.load %arg6[%c0_4, %c0_5] : memref<1x32xf32, #tpu.memory_space<vmem>>, vector<1x32xf32>
    %c0_6 = arith.constant 0 : index
    %c0_7 = arith.constant 0 : index
    %4 = vector.load %arg7[%c0_6, %c0_7] : memref<32x32xbf16, #tpu.memory_space<vmem>>, vector<32x32xbf16>
    %c0_8 = arith.constant 0 : index
    %c0_9 = arith.constant 0 : index
    %5 = vector.load %arg8[%c0_8, %c0_9] : memref<1x32xf32, #tpu.memory_space<vmem>>, vector<1x32xf32>
    %cst = arith.constant dense<0.000000e+00> : vector<64x32xf32>
    %6 = tpu.matmul %1, %2, %cst {dimension_numbers = #tpu.dot_dimension_numbers<[1], [0], [0], [1], [0, 0, 1, 1], [], []>} : vector<64x32xbf16>, vector<32x32xbf16>, vector<64x32xf32> -> vector<64x32xf32>
    %7 = vector.broadcast %3 : vector<1x32xf32> to vector<64x32xf32>
    %8 = arith.addf %6, %7 : vector<64x32xf32>
    %cst_10 = arith.constant 0.000000e+00 : f32
    %9 = vector.broadcast %cst_10 : f32 to vector<64x32xf32>
    %10 = arith.maximumf %8, %9 : vector<64x32xf32>
    %11 = arith.truncf %10 : vector<64x32xf32> to vector<64x32xbf16>
    %cst_11 = arith.constant dense<0.000000e+00> : vector<64x32xf32>
    %12 = tpu.matmul %11, %4, %cst_11 {dimension_numbers = #tpu.dot_dimension_numbers<[1], [0], [0], [1], [0, 0, 1, 1], [], []>} : vector<64x32xbf16>, vector<32x32xbf16>, vector<64x32xf32> -> vector<64x32xf32>
    %13 = vector.broadcast %5 : vector<1x32xf32> to vector<64x32xf32>
    %14 = arith.addf %12, %13 : vector<64x32xf32>
    %cst_12 = arith.constant 0.000000e+00 : f32
    %15 = vector.broadcast %cst_12 : f32 to vector<64x32xf32>
    %16 = arith.maximumf %14, %15 : vector<64x32xf32>
    %c0_13 = arith.constant 0 : index
    %c0_14 = arith.constant 0 : index
    %c0_15 = arith.constant 0 : index
    %17 = vector.load %arg2[%c0_13, %c0_14, %c0_15] : memref<1x1x64xf32, #tpu.memory_space<vmem>>, vector<1x1x64xf32>
    %18 = vector.shape_cast %17 : vector<1x1x64xf32> to vector<1x64xf32>
    %cst_16 = arith.constant dense<0.000000e+00> : vector<1xf32>
    %19 = vector.multi_reduction <add>, %18, %cst_16 [1] : vector<1x64xf32> to vector<1xf32>
    %20 = vector.shape_cast %19 : vector<1xf32> to vector<1x1xf32>
    %cst_17 = arith.constant 9.99999997E-7 : f32
    %21 = vector.broadcast %cst_17 : f32 to vector<1x1xf32>
    %22 = arith.addf %20, %21 : vector<1x1xf32>
    %23 = tpu.reciprocal %22 {approx = true} : vector<1x1xf32> -> vector<1x1xf32>
    %24 = vector.broadcast %23 : vector<1x1xf32> to vector<1x64xf32>
    %25 = arith.mulf %18, %24 : vector<1x64xf32>
    %cst_18 = arith.constant dense<0.000000e+00> : vector<1x32xf32>
    %26 = tpu.matmul %25, %16, %cst_18 {dimension_numbers = #tpu.dot_dimension_numbers<[1], [0], [0], [1], [0, 0, 1, 1], [], []>} : vector<1x64xf32>, vector<64x32xf32>, vector<1x32xf32> -> vector<1x32xf32>
    %27 = arith.truncf %26 : vector<1x32xf32> to vector<1x32xbf16>
    %c0_19 = arith.constant 0 : index
    %c0_20 = arith.constant 0 : index
    %28 = vector.load %arg9[%c0_19, %c0_20] : memref<32x32xbf16, #tpu.memory_space<vmem>>, vector<32x32xbf16>
    %cst_21 = arith.constant dense<0.000000e+00> : vector<1x32xf32>
    %29 = tpu.matmul %27, %28, %cst_21 {dimension_numbers = #tpu.dot_dimension_numbers<[1], [0], [0], [1], [0, 0, 1, 1], [], []>} : vector<1x32xbf16>, vector<32x32xbf16>, vector<1x32xf32> -> vector<1x32xf32>
    %c0_22 = arith.constant 0 : index
    %c0_23 = arith.constant 0 : index
    %30 = vector.load %arg10[%c0_22, %c0_23] : memref<1x32xf32, #tpu.memory_space<vmem>>, vector<1x32xf32>
    %31 = arith.addf %29, %30 : vector<1x32xf32>
    %c0_24 = arith.constant 0 : index
    %c0_25 = arith.constant 0 : index
    %c0_26 = arith.constant 0 : index
    %32 = vector.load %arg11[%c0_24, %c0_25, %c0_26] : memref<1x1x32xf32, #tpu.memory_space<vmem>>, vector<1x1x32xf32>
    %33 = vector.shape_cast %32 : vector<1x1x32xf32> to vector<1x32xf32>
    %34 = vector.shape_cast %31 : vector<1x32xf32> to vector<1x1x32xf32>
    tpu.vector_store %arg11[%c0_24, %c0_25, %c0_26], %34 {strides = array<i32>} : memref<1x1x32xf32, #tpu.memory_space<vmem>>, vector<1x1x32xf32>,
    %35 = arith.truncf %16 : vector<64x32xf32> to vector<64x32xbf16>
    %c0_27 = arith.constant 0 : index
    %c0_28 = arith.constant 0 : index
    %c0_29 = arith.constant 0 : index
    %36 = vector.load %arg3[%c0_27, %c0_28, %c0_29] : memref<1x32x128xbf16, #tpu.memory_space<vmem>>, vector<1x32x128xbf16>
    %37 = vector.shape_cast %36 : vector<1x32x128xbf16> to vector<32x128xbf16>
    %cst_30 = arith.constant dense<0.000000e+00> : vector<64x128xf32>
    %38 = tpu.matmul %35, %37, %cst_30 {dimension_numbers = #tpu.dot_dimension_numbers<[1], [0], [0], [1], [0, 0, 1, 1], [], []>} : vector<64x32xbf16>, vector<32x128xbf16>, vector<64x128xf32> -> vector<64x128xf32>
    %c0_31 = arith.constant 0 : index
    %c0_32 = arith.constant 0 : index
    %39 = vector.load %arg4[%c0_31, %c0_32] : memref<1x128xf32, #tpu.memory_space<vmem>>, vector<1x128xf32>
    %40 = vector.broadcast %39 : vector<1x128xf32> to vector<64x128xf32>
    %41 = arith.addf %38, %40 : vector<64x128xf32>
    %c0_33 = arith.constant 0 : index
    %c0_34 = arith.constant 0 : index
    %c0_35 = arith.constant 0 : index
    %42 = vector.load %arg12[%c0_33, %c0_34, %c0_35] : memref<1x64x128xf32, #tpu.memory_space<vmem>>, vector<1x64x128xf32>
    %43 = vector.shape_cast %42 : vector<1x64x128xf32> to vector<64x128xf32>
    %44 = vector.shape_cast %41 : vector<64x128xf32> to vector<1x64x128xf32>
    tpu.vector_store %arg12[%c0_33, %c0_34, %c0_35], %44 {strides = array<i32>} : memref<1x64x128xf32, #tpu.memory_space<vmem>>, vector<1x64x128xf32>,
    return
  }
  func.func @transform_0(%arg0: i32) -> (i32, i32, i32) {
    %c0_i32 = arith.constant 0 : i32
    %c0_i32_0 = arith.constant 0 : i32
    %c0_i32_1 = arith.constant 0 : i32
    return %arg0, %c0_i32, %c0_i32_0 : i32, i32, i32
  }
  func.func @transform_1(%arg0: i32) -> (i32, i32, i32) {
    %c0_i32 = arith.constant 0 : i32
    %c0_i32_0 = arith.constant 0 : i32
    %c0_i32_1 = arith.constant 0 : i32
    return %arg0, %c0_i32, %c0_i32_0 : i32, i32, i32
  }
  func.func @transform_2(%arg0: i32) -> (i32, i32, i32) {
    %c0_i32 = arith.constant 0 : i32
    %c0_i32_0 = arith.constant 0 : i32
    %c0_i32_1 = arith.constant 0 : i32
    return %arg0, %c0_i32, %c0_i32_0 : i32, i32, i32
  }
  func.func @transform_3(%arg0: i32) -> (i32, i32) {
    %c0_i32 = arith.constant 0 : i32
    %c0_i32_0 = arith.constant 0 : i32
    %c0_i32_1 = arith.constant 0 : i32
    return %c0_i32, %c0_i32_0 : i32, i32
  }
  func.func @transform_4(%arg0: i32) -> (i32, i32) {
    %c0_i32 = arith.constant 0 : i32
    %c0_i32_0 = arith.constant 0 : i32
    %c0_i32_1 = arith.constant 0 : i32
    return %c0_i32, %c0_i32_0 : i32, i32
  }
  func.func @transform_5(%arg0: i32) -> (i32, i32) {
    %c0_i32 = arith.constant 0 : i32
    %c0_i32_0 = arith.constant 0 : i32
    %c0_i32_1 = arith.constant 0 : i32
    return %c0_i32, %c0_i32_0 : i32, i32
  }
  func.func @transform_6(%arg0: i32) -> (i32, i32) {
    %c0_i32 = arith.constant 0 : i32
    %c0_i32_0 = arith.constant 0 : i32
    %c0_i32_1 = arith.constant 0 : i32
    return %c0_i32, %c0_i32_0 : i32, i32
  }
  func.func @transform_7(%arg0: i32) -> (i32, i32) {
    %c0_i32 = arith.constant 0 : i32
    %c0_i32_0 = arith.constant 0 : i32
    %c0_i32_1 = arith.constant 0 : i32
    return %c0_i32, %c0_i32_0 : i32, i32
  }
  func.func @transform_8(%arg0: i32) -> (i32, i32) {
    %c0_i32 = arith.constant 0 : i32
    %c0_i32_0 = arith.constant 0 : i32
    %c0_i32_1 = arith.constant 0 : i32
    return %c0_i32, %c0_i32_0 : i32, i32
  }
  func.func @transform_9(%arg0: i32) -> (i32, i32) {
    %c0_i32 = arith.constant 0 : i32
    %c0_i32_0 = arith.constant 0 : i32
    %c0_i32_1 = arith.constant 0 : i32
    return %c0_i32, %c0_i32_0 : i32, i32
  }
  func.func @transform_10(%arg0: i32) -> (i32, i32, i32) {
    %c0_i32 = arith.constant 0 : i32
    %c0_i32_0 = arith.constant 0 : i32
    %c0_i32_1 = arith.constant 0 : i32
    return %arg0, %c0_i32, %c0_i32_0 : i32, i32, i32
  }
  func.func @transform_11(%arg0: i32) -> (i32, i32, i32) {
    %c0_i32 = arith.constant 0 : i32
    %c0_i32_0 = arith.constant 0 : i32
    %c0_i32_1 = arith.constant 0 : i32
    return %arg0, %c0_i32, %c0_i32_0 : i32, i32, i32
  }
}

</mosaic_0001>

<bundles_post_ra>
// kernel: squeeze.23
= control target key start
LH: loop header
LB: loop body
LE: loop exit
PB: predicated region body
PF: predicated region fallthrough
CT: control target
= control target key end

     0   :  { %s135_s0 = inlined_call_operand.vmem [shape: f32[4,64], index: 0, kind: input, shape index: {}]   ;;  %s136_s1 = inlined_call_operand.hbm [shape: f32[2,2,8,8], index: 1, kind: output, shape index: {}]  }
   0x1   :  { %v5_v0 = vld [vmem:[%s135_s0] sm:$0xf] }
   0x2   :  { %6 = vst [vmem:[#allocation2] sm:$0xf] %v5_v0 }
   0x3   :  { %2 = vsyncpa [#allocation1], 0  ;;  %s94_s0 = smov 120   ;;  %s95_s8 = smov 104   ;;  %vm8_vm0 = vcmask 64512  }
   0x4   :  { %s96_s9 = smov 112   ;;  %s97_s10 = smov 96  }
   0x5   :  { %s98_s11 = smov 88   ;;  %s99_s12 = smov 80  }
   0x6   :  { %s100_s13 = smov 72   ;;  %s101_s14 = smov [#allocation0]  }
   0x7   :  { %s56_s15 = sshll.u32 %s101_s14, 4  ;;  %s57_s15 = int_to_ptr.vmem [resolvable:$true] %s56_s15 }
   0x8   :  { %s70_s16 = scalar_lea.vmem %s57_s15, 512  ;;  %p75_p1 = scmp.lt.s32.totalorder %s57_s15, %s57_s15 }
   0x9   :  { %v10_v1 = vld [vmem:[#allocation2] sm:$0xf]   ;;  %p71_p0 = scmp.ne.s32.totalorder %s57_s15, %s70_s16  ;;  %p76_p2 = scmp.lt.s32.totalorder %s70_s16, %s70_s16 }
   0xa   :  { %v22_v2 = vld [vmem:[#allocation2] sm:$0xf]   ;;  %11 = vrot.lane.b32.xlu0 %v10_v1, %s94_s0 }
   0xb   :  { %23 = vrot.lane.b32.xlu1 %v22_v2, %s95_s8  ;;  %v16_v3 = vld [vmem:[#allocation2] sm:$0xf]   ;;  %p77_p3 = por %p76_p2, %p75_p1 }
   0xc   :  { %v28_v4 = vld [vmem:[#allocation2] sm:$0xf]  }
   0xd   :  { %v7_v5 = vld [vmem:[#allocation2] sm:$0xf]   ;;  %p78_p4 = pnand %p77_p3, %p71_p0 }
   0xe   :  { %9 = vst.msk [vmem:[#allocation0] ss:$8 sm:$0xf] %vm8_vm0, %v7_v5   ;;  %17 = vrot.lane.b32.xlu0 %v16_v3, %s96_s9  ;;  %v34_v6 = vld [vmem:[#allocation2] sm:$0xf]  }
   0xf   :  { %29 = vrot.lane.b32.xlu1 %v28_v4, %s97_s10  ;;  %v40_v7 = vld [vmem:[#allocation2] sm:$0xf]  }
  0x10   :  { %v46_v8 = vld [vmem:[#allocation2] sm:$0xf]  }
  0x12   :  { %35 = vrot.lane.b32.xlu0 %v34_v6, %s98_s11 }
  0x13   :  { %41 = vrot.lane.b32.xlu1 %v40_v7, %s99_s12 }
  0x16   :  { %47 = vrot.lane.b32.xlu0 %v46_v8, %s100_s13 }
  0x7c   :  { %v12_v9 = vpop.permute.xlu0 %11  }
  0x7d   :  { %v24_v10 = vpop.permute.xlu1 %23   ;;  %15 = vst.msk [vmem:[#allocation0 + $0x1] ss:$8 sm:$0xf] %vm8_vm0, %v12_v9  }
  0x7e   :  { %27 = vst.msk [vmem:[#allocation0 + $0x3] ss:$8 sm:$0xf] %vm8_vm0, %v24_v10  }
  0x80   :  { %v18_v11 = vpop.permute.xlu0 %17  }
  0x81   :  { %v30_v12 = vpop.permute.xlu1 %29   ;;  %21 = vst.msk [vmem:[#allocation0 + $0x2] ss:$8 sm:$0xf] %vm8_vm0, %v18_v11  }
  0x82   :  { %33 = vst.msk [vmem:[#allocation0 + $0x4] ss:$8 sm:$0xf] %vm8_vm0, %v30_v12  }
  0x84   :  { %v36_v13 = vpop.permute.xlu0 %35  }
  0x85   :  { %v42_v14 = vpop.permute.xlu1 %41   ;;  %39 = vst.msk [vmem:[#allocation0 + $0x5] ss:$8 sm:$0xf] %vm8_vm0, %v36_v13  }
  0x86   :  { %45 = vst.msk [vmem:[#allocation0 + $0x6] ss:$8 sm:$0xf] %vm8_vm0, %v42_v14  }
  0x88   :  { %v48_v15 = vpop.permute.xlu0 %47  }
  0x89   :  { %51 = vst.msk [vmem:[#allocation0 + $0x7] ss:$8 sm:$0xf] %vm8_vm0, %v48_v15  }
  0x8a   :  { %81 = shalt.err (!%p78_p4)
}
  0x8b   :  { %s82_s19 = scalar_lea.hbm %s136_s1, 512 }
  0x8c   :  { %p83_p5 = scmp.ne.s32.totalorder %s136_s1, %s82_s19  ;;  %p86_p6 = scmp.lt.u32.totalorder %s82_s19, %s136_s1 }
  0x8e   :  { %p88_p7 = pnand %p86_p6, %p83_p5 }
  0x90   :  { %91 = shalt.err (!%p88_p7)
}
  0x91   :  { %59 = dma.vmem_to_hbm [thread:$0]  %s57_s15, 512, %s136_s1, [#allocation1]  }
  0x92   :  { %92 = dma.done.wait [#allocation1], 512  }
  0x93   :  { %93 = vsyncadd [#allocation1], 4294966784 }
  0x94   :  { %61 = vsyncpa [#allocation1], 1 }

// kernel: ssl_tompnet_forward.2
= control target key start
LH: loop header
LB: loop body
LE: loop exit
PB: predicated region body
PF: predicated region fallthrough
CT: control target
= control target key end

     0   :  { %15 = vsyncpa [#allocation3], 0  ;;  %s1295_s0 = inlined_call_operand.vmem [shape: bf16[4,64,32], index: 0, kind: input, shape index: {}]   ;;  %s1296_s1 = inlined_call_operand.vmem [shape: f32[4,1,64], index: 1, kind: input, shape index: {}]   ;;  %s1297_s2 = inlined_call_operand.vmem [shape: bf16[32,32], index: 2, kind: input, shape index: {}]   ;;  %s1298_s3 = inlined_call_operand.vmem [shape: f32[1,32], index: 3, kind: input, shape index: {}]   ;;  %s1299_s4 = inlined_call_operand.vmem [shape: bf16[32,32], index: 4, kind: input, shape index: {}]   ;;  %s1300_s5 = inlined_call_operand.vmem [shape: f32[1,32], index: 5, kind: input, shape index: {}]   ;;  %s1301_s6 = inlined_call_operand.vmem [shape: bf16[32,32], index: 6, kind: input, shape index: {}]   ;;  %s1302_s7 = inlined_call_operand.vmem [shape: f32[1,32], index: 7, kind: input, shape index: {}]   ;;  %s1303_s8 = inlined_call_operand.vmem [shape: f32[4,1,32], index: 8, kind: output, shape index: {0}]   ;;  %s1304_s9 = inlined_call_operand.hbm [shape: f32[4,1,32], index: 9, kind: output, shape index: {1}]  }
   0x1   :  { %17 = vsyncpa [#allocation3 + $0x1], 0  ;;  %s1142_s30 = smov 0   ;;  %s1144_s10 = smov 0  }
   0x2   :  { %s1146_s11 = smov 0   ;;  %s1148_s12 = smov 0  }
   0x3 LB: > { %s1163_s13 = sadd.s32 4294967295, %s1086_s12   ;;  %s851_s14 = sadd.s32 4294967294, %s1086_s12   ;;  %s1086_s12 = sphi %s1148_s12, %s1310_s12   ;;  %s1082_s11 = sphi %s1146_s11, %s1309_s11   ;;  %s1078_s10 = sphi %s1144_s10, %s1308_s10   ;;  %s1074_s30 = sphi %s1142_s30, %s1307_s30  }
   0x4   : > { %s1167_s15 = sadd.s32 1, %s1086_s12   ;;  %s234_s16 = sadd.s32 1, %s1082_s11 }
   0x5   : > { %s231_s17 = ssub.s32 %s1086_s12, %s1167_s15  ;;  %p244_p0 = scmp.ne.s32.totalorder %s1082_s11, %s1078_s10 }
   0x6   : > { %p232_p1 = scmp.eq.s32.totalorder %s231_s17, 0  ;;  %p245_p2 = scmp.eq.s32.totalorder %s1163_s13, 3 }
   0x7   : > { %p250_p3 = scmp.ne.s32.totalorder %s1078_s10, %s1074_s30  ;;  %p251_p4 = scmp.eq.s32.totalorder %s851_s14, 3 }
   0x8   : > { %s1178_s18 = scalar_select %p232_p1, %s1082_s11, %s234_s16  }
   0x9   : > { %p1180_p5 = por %p245_p2, %p244_p0  ;;  %p1184_p6 = por %p251_p4, %p250_p3 }
   0xa   : > { %p854_p7 = scmp.ge.s32.totalorder %s1086_s12, 1  ;;  %p301_p8 = scmp.lt.s32.totalorder %s1086_s12, 5 }
   0xc   : > { %p302_p9 = pnand %p854_p7, %p301_p8 }
   0xd   : > { %v1012_v0 = vld [vmem:[%s1297_s2] sm:$0xff] (!%p302_p9)   ;;  %p342_p10 = scmp.lt.s32.totalorder (!%p302_p9), %s1163_s13, 3  ;;  %v1013_v1 = vld [vmem:[%s1297_s2 + $0x8] sm:$0xff] (!%p302_p9)   ;;  %vm410_vm0 = vcmask (!%p302_p9), 261120   ;;  %vm604_vm1 = vcmask (!%p302_p9), 516096   ;;  %v1088_v39 = vmov (!%p302_p9), 0.0|0.0  }
   0xe   : > { %305 = sbr.rel (%p302_p9) target bundleno = 927 (0x39f), region = 52  ;;  %907 = vmatprep.subr.bf16.mxu0 (!%p302_p9), %v1012_v0  ;;  %v1018_v6 = vld [vmem:[%s1299_s4] sm:$0xff] (!%p302_p9)   ;;  %v1019_v7 = vld [vmem:[%s1299_s4 + $0x8] sm:$0xff] (!%p302_p9)   ;;  %vm1089_vm2 = vmmov (!%p302_p9), 0   ;;  %v1090_v40 = vmov (!%p302_p9), 0.0   ;;  %vm611_vm3 = vcmask (!%p302_p9), 523264  }
   0xf   : > { %908 = vmatpush3.bf16.msra.mxu0 (!%p302_p9), %v1012_v0  ;;  %919 = vmatprep.subr.bf16.mxu1 (!%p302_p9), %v1018_v6  ;;  %v857_v10 = vld [vmem:[%s1298_s3] ss:$0 sm:$0xff] (!%p302_p9)  ;;  %v1021_v42 = vld [vmem:[%s1301_s6 + $0x8] sm:$0xff] (!%p302_p9)   ;;  %vm746_vm4 = vcmask (!%p302_p9), 253952   ;;  %s1091_s23 = smov (!%p302_p9), [#allocation2]  }
  0x10   : > { %909 = vmatprep.subr.bf16.mxu0 (!%p302_p9), %v1013_v1  ;;  %920 = vmatpush3.bf16.msra.mxu1 (!%p302_p9), %v1018_v6  ;;  %v1020_v41 = vld [vmem:[%s1301_s6] sm:$0xff] (!%p302_p9)  }
  0x11   : > { %921 = vmatprep.subr.bf16.mxu1 (!%p302_p9), %v1019_v7  ;;  %v868_v43 = vld [vmem:[%s1300_s5] ss:$0 sm:$0xff] (!%p302_p9) }
  0x13   : > { %910 = vmatpush3.bf16.msra.mxu0 (!%p302_p9), %v1013_v1 }
  0x14   : > { %922 = vmatpush3.bf16.msra.mxu1 (!%p302_p9), %v1019_v7  ;;  %958 = vmatprep.subr.bf16.mxu0 (!%p302_p9), %v1088_v39 }
  0x15   : > { %s1198_s25 = scalar_select %p342_p10, %s1163_s13, 3  ;;  %950 = vmatprep.subr.bf16.mxu1 %v1090_v40 }
  0x17   : > { %s882_s26 = sshll.u32 %s1198_s25, 5  ;;  %s349_s24 = scalar_lea.vmem %s1296_s1, %s1198_s25 }
  0x18   : > { %s346_s29 = scalar_lea.vmem %s1295_s0, %s882_s26  ;;  %v1218_v8 = vld [vmem:[%s349_s24] sm:$0x1]  ;;  %s352_s24 = scalar_lea.vmem %s1303_s8, %s1198_s25 }
  0x19   : > { %v1014_v2 = vld [vmem:[%s346_s29] sm:$0xff]   ;;  %v1015_v3 = vld [vmem:[%s346_s29 + $0x8] sm:$0xff]   ;;  %v1016_v4 = vld [vmem:[%s346_s29 + $0x10] sm:$0xff]   ;;  %v605_v9 = vsel %vm604_vm1, %v1218_v8, 0.0  ;;  %s340_s26 = sand.u32 1, %s1078_s10  }
  0x1a   : > { %911 = vmatprep.mubr.msk.bf16.mxu0 %vm410_vm0, %v1014_v2  ;;  %v1017_v5 = vld [vmem:[%s346_s29 + $0x18] sm:$0xff]   ;;  %606 = vadd.xlane.f32.xlu0 %v605_v9  ;;  %s879_s29 = sshll.u32 %s1163_s13, 4  ;;  %s341_s14 = scalar_lea.vmem [#allocation2], %s340_s26 }
  0x1b   : > { %912 = vmatmul.mubr.msk.bf16.vlgmr.msra.gmra.mrb[0].mxu0 %vm410_vm0, %v1015_v3  ;;  %s768_s16 = sshll.u32 %s341_s14, 4  ;;  %s1252_s21 = scalar_lea.hbm %s1304_s9, %s879_s29  ;;  %s1254_s16 = int_to_ptr.vmem [resolvable:$true] %s768_s16 }
  0x1c   : > { %915 = vmatprep.mubr.msk.bf16.mxu0 %vm410_vm0, %v1016_v4  ;;  %s753_s13 = scalar_lea.sflag [#allocation3], %s340_s26  ;;  %s1024_s22 = scalar_lea.vmem %s1254_s16, 16 }
  0x1d   : > { %p1025_p11 = scmp.ne.s32.totalorder %s1254_s16, %s1024_s22 }
  0x1f   : > { %p1026_p12 = pnand %p1025_p11, %p1180_p5 }
  0x21   : > { %p1027_p13 = pneg %p1026_p12 }
  0x23   : > { %916 = vmatmul.mubr.msk.bf16.gmra.mrb[4].mxu0 %vm410_vm0, %v1017_v5 }
  0x24   : > { %947 = vmatprep.mubr.msk.f32.mxu0 %vm1089_vm2, %v1090_v40 }
  0xa7   : > { %v607_v47 = vpop.xlane.xlu0 %606 }
  0xa8   : > { %v608_v53 = vadd.f32 1e-06, %v607_v47 }
  0xaa   : > { %1022 = vrcp.f32 %v608_v53 }
  0xee   : > { %v913_v11 = vpop.f32.mrb[0].mxu0 }
  0xef   : > { %v466_v12 = vadd.f32 %v913_v11, %v857_v10  ;;  %v457_v13 = vpop.f32.mrb[1].mxu0  ;;  %v1023_v11 = vpop.eup %1022 }
  0xf0   : > { %v458_v14 = vadd.f32 %v857_v10, %v457_v13  ;;  %v914_v15 = vpop.f32.mrb[2].mxu0 }
  0xf1   : > { %v469_v16 = vadd.f32 %v914_v15, %v857_v10  ;;  %v460_v17 = vpop.f32.mrb[3].mxu0  ;;  %v490_v19 = vmax.f32 %v466_v12, 0.0  ;;  %v610_v12 = vmul.f32 %v1023_v11, %v1218_v8  ;;  %v690_v8 = vld [vmem:[%s1302_s7] sm:$0x1] }
  0xf2   : > { %v461_v18 = vadd.f32 %v857_v10, %v460_v17  ;;  %v488_v21 = vmax.f32 %v458_v14, 0.0 }
  0xf3   : > { %v491_v20 = vmax.f32 %v469_v16, 0.0 }
  0xf4   : > { %v489_v22 = vmax.f32 %v461_v18, 0.0 }
  0xf5   : > { %v497_v23 = vpack.c.bf16 %v491_v20, %v490_v19 }
  0xf6   : > { %v917_v24 = vpop.f32.mrb[4].mxu0  ;;  %v496_v25 = vpack.c.bf16 %v489_v22, %v488_v21 }
  0xf7   : > { %v482_v26 = vadd.f32 %v917_v24, %v857_v10  ;;  %v473_v27 = vpop.f32.mrb[5].mxu0 }
  0xf8   : > { %v474_v28 = vadd.f32 %v857_v10, %v473_v27  ;;  %v918_v29 = vpop.f32.mrb[6].mxu0  ;;  %923 = vmatprep.mubr.msk.bf16.mxu1 %vm410_vm0, %v496_v25 }
  0xf9   : > { %v485_v30 = vadd.f32 %v918_v29, %v857_v10  ;;  %v476_v31 = vpop.f32.mrb[7].mxu0  ;;  %924 = vmatmul.mubr.msk.bf16.vlgmr.msra.gmra.mrb[0].mxu1 %vm410_vm0, %v497_v23  ;;  %v494_v33 = vmax.f32 %v482_v26, 0.0 }
  0xfa   : > { %v477_v32 = vadd.f32 %v857_v10, %v476_v31  ;;  %v492_v35 = vmax.f32 %v474_v28, 0.0  ;;  %951 = vmatpush3.bf16.msra.mxu1 %v1020_v41 }
  0xfb   : > { %v495_v34 = vmax.f32 %v485_v30, 0.0  ;;  %952 = vmatprep.subr.bf16.mxu1 %v1090_v40 }
  0xfc   : > { %v493_v36 = vmax.f32 %v477_v32, 0.0 }
  0xfd   : > { %v499_v37 = vpack.c.bf16 %v495_v34, %v494_v33 }
  0xfe   : > { %v498_v38 = vpack.c.bf16 %v493_v36, %v492_v35  ;;  %953 = vmatpush3.bf16.msra.mxu1 %v1021_v42 }
 0x100   : > { %927 = vmatprep.mubr.msk.bf16.mxu1 %vm410_vm0, %v498_v38 }
 0x101   : > { %928 = vmatmul.mubr.msk.bf16.gmra.mrb[4].mxu1 %vm410_vm0, %v499_v37 }
 0x102   : > { %954 = vmatprep.mubr.msk.bf16.mxu1 %vm1089_vm2, %v1090_v40 }
 0x1cc   : > { %v925_v44 = vpop.f32.mrb[0].mxu1 }
 0x1cd   : > { %v573_v45 = vadd.f32 %v925_v44, %v868_v43  ;;  %v564_v46 = vpop.f32.mrb[1].mxu1 }
 0x1ce   : > { %v565_v48 = vadd.f32 %v868_v43, %v564_v46  ;;  %v926_v49 = vpop.f32.mrb[2].mxu1 }
 0x1cf   : > { %v576_v50 = vadd.f32 %v926_v49, %v868_v43  ;;  %v567_v51 = vpop.f32.mrb[3].mxu1  ;;  %v597_v54 = vmax.f32 %v573_v45, 0.0 }
 0x1d0   : > { %v568_v52 = vadd.f32 %v868_v43, %v567_v51  ;;  %v595_v56 = vmax.f32 %v565_v48, 0.0 }
 0x1d1   : > { %v598_v55 = vmax.f32 %v576_v50, 0.0 }
 0x1d2   : > { %v596_v57 = vmax.f32 %v568_v52, 0.0 }
 0x1d3   : > { %v962_v58 = vpack.c.bf16 %v598_v55, %v597_v54 }
 0x1d4   : > { %v959_v59 = vpack.c.bf16 %v596_v57, %v595_v56  ;;  %v929_v60 = vpop.f32.mrb[4].mxu1 }
 0x1d5   : > { %v589_v61 = vadd.f32 %v929_v60, %v868_v43  ;;  %v580_v62 = vpop.f32.mrb[5].mxu1 }
 0x1d6   : > { %v581_v63 = vadd.f32 %v868_v43, %v580_v62  ;;  %v930_v0 = vpop.f32.mrb[6].mxu1  ;;  %960 = vmatpush3.bf16.msra.mxu0 %v959_v59 }
 0x1d7   : > { %v592_v1 = vadd.f32 %v930_v0, %v868_v43  ;;  %v583_v2 = vpop.f32.mrb[7].mxu1  ;;  %961 = vmatprep.subr.bf16.mxu0 %v1088_v39  ;;  %v601_v4 = vmax.f32 %v589_v61, 0.0 }
 0x1d8   : > { %v584_v3 = vadd.f32 %v868_v43, %v583_v2  ;;  %v599_v6 = vmax.f32 %v581_v63, 0.0 }
 0x1d9   : > { %v602_v5 = vmax.f32 %v592_v1, 0.0 }
 0x1da   : > { %v600_v7 = vmax.f32 %v584_v3, 0.0  ;;  %963 = vmatpush3.bf16.msra.mxu0 %v962_v58 }
 0x1db   : > { %v968_v9 = vpack.c.bf16 %v602_v5, %v601_v4  ;;  %964 = vmatprep.subr.bf16.mxu0 %v1088_v39 }
 0x1dc   : > { %v965_v10 = vpack.c.bf16 %v600_v7, %v599_v6 }
 0x1de   : > { %966 = vmatpush3.bf16.msra.mxu0 %v965_v10 }
 0x1df   : > { %967 = vmatprep.subr.bf16.mxu0 %v1088_v39 }
 0x1e2   : > { %969 = vmatpush3.bf16.msra.mxu0 %v968_v9 }
 0x1e5   : > { %948 = vmatmul.mubr.msk.f32.vlgmr.msra.gmra.mrb[8].mxu0 %vm611_vm3, %v610_v12 }
 0x2b8   : > { %v681_v13 = vpop.f32.mrb[8].mxu0 }
 0x2b9   : > { %v685_v14 = vpack.c.bf16 %v681_v13, %v681_v13  ;;  %747 = vst.msk [vmem:[%s352_s24] sm:$0x1] %vm746_vm4, %v681_v13  ;;  %v949_v15 = vpop.f32.mrb[9].mxu0  ;;  %s1028_s24 = sshll.u32 %s1091_s23, 4  ;;  %s1029_s24 = int_to_ptr.vmem [resolvable:$false] %s1028_s24 }
 0x2ba   : > { %s1030_s27 = scalar_lea.vmem %s1029_s24, 32  ;;  %p1031_p0 = scmp.lt.s32.totalorder %s1254_s16, %s1029_s24 }
 0x2bb   : > { %955 = vmatmul.mubr.msk.bf16.vlgmr.msra.gmra.mrb[8].mxu1 %vm410_vm0, %v685_v14  ;;  %p1032_p1 = scmp.lt.s32.totalorder %s1030_s27, %s1024_s22 }
 0x2bd   : > { %p1033_p2 = por %p1032_p1, %p1031_p0 }
 0x2bf   : > { %p1034_p3 = pnand %p1033_p2, %p1027_p13 }
 0x38e   : > { %v740_v16 = vpop.f32.mrb[8].mxu1 }
 0x38f   : > { %v741_v17 = vadd.f32 %v740_v16, %v690_v8  ;;  %v956_v18 = vpop.f32.mrb[9].mxu1 }
 0x390   : > { %v743_v19 = vpop.f32.mrb[10].mxu1 }
 0x391   : > { %v957_v20 = vpop.f32.mrb[11].mxu1  ;;  %748 = vst.msk [vmem:[%s341_s14] sm:$0x1] %vm746_vm4, %v741_v17 }
 0x392   : > { %1037 = shalt.err (!%p1034_p3)
}
 0x393   : > { %s1038_s26 = scalar_lea.hbm %s1252_s21, 16  ;;  %s1042_s14 = scalar_lea.hbm %s1304_s9, 64 }
 0x394   : > { %p1039_p4 = scmp.ne.s32.totalorder %s1252_s21, %s1038_s26  ;;  %p1043_p9 = scmp.lt.u32.totalorder %s1252_s21, %s1304_s9 }
 0x395   : > { %p1044_p10 = scmp.lt.u32.totalorder %s1042_s14, %s1038_s26  ;;  %p1046_p12 = scmp.lt.u32.totalorder %s1038_s26, %s1252_s21 }
 0x396   : > { %p1040_p7 = pnand %p1039_p4, %p1180_p5 }
 0x397   : > { %p1045_p11 = por %p1044_p10, %p1043_p9 }
 0x398   : > { %p1041_p8 = pneg %p1040_p7 }
 0x399   : > { %p1047_p13 = por %p1046_p12, %p1045_p11 }
 0x39b   : > { %p1048_p0 = pnand %p1047_p13, %p1041_p8 }
 0x39d   : > { %1051 = shalt.err (!%p1048_p0)
}
 0x39e   : > { %970 = dma.vmem_to_hbm [thread:$0]  (%p1180_p5), %s1254_s16, 16, %s1252_s21, %s753_s13  }
 0x39f PF: > { %p976_p1 = scmp.ge.s32.totalorder %s1086_s12, 2  ;;  %s786_s22 = sand.u32 1, %s1074_s30  }
 0x3a0   : > { %s787_s23 = scalar_lea.sflag [#allocation3], %s786_s22 }
 0x3a1   : > { %p973_p2 = pnand %p976_p1, %p1184_p6 }
 0x3a3   : > { %1069 = dma.done.wait (!%p973_p2), %s787_s23, 16  }
 0x3a4   : > { %1071 = vsyncadd (!%p973_p2), %s787_s23, 4294967280  ;;  %p20_p3 = scmp.ge.s32.totalorder %s1167_s15, 6   ;;  %s1307_s30 = smov %s1078_s10 }
 0x3a5   : > { %s1308_s10 = smov %s1082_s11  ;;  %s1309_s11 = smov %s1178_s18 }
 0x3a6   : > { %s1310_s12 = smov %s1167_s15  ;;  %22 = sbr.rel (!%p20_p3) target bundleno = 3 (0x3), region = 102 }
 0x3ad   :  { %791 = vsyncpa [#allocation3], 1 }
 0x3ae   :  { %793 = vsyncpa [#allocation3 + $0x1], 1 }

// kernel: ssl_tompnet_forward.3
= control target key start
LH: loop header
LB: loop body
LE: loop exit
PB: predicated region body
PF: predicated region fallthrough
CT: control target
= control target key end

     0   :  { %s1558_s0 = inlined_call_operand.vmem [shape: bf16[4,64,32], index: 0, kind: input, shape index: {}]   ;;  %s1559_s1 = inlined_call_operand.vmem [shape: f32[4,1,64], index: 1, kind: input, shape index: {}]   ;;  %s1560_s2 = inlined_call_operand.vmem [shape: bf16[4,32,128], index: 2, kind: input, shape index: {}]   ;;  %s1561_s3 = inlined_call_operand.vmem [shape: f32[1,128], index: 3, kind: input, shape index: {}]   ;;  %s1562_s4 = inlined_call_operand.vmem [shape: bf16[32,32], index: 4, kind: input, shape index: {}]   ;;  %s1563_s5 = inlined_call_operand.vmem [shape: f32[1,32], index: 5, kind: input, shape index: {}]   ;;  %s1564_s6 = inlined_call_operand.vmem [shape: bf16[32,32], index: 6, kind: input, shape index: {}]   ;;  %s1565_s7 = inlined_call_operand.vmem [shape: f32[1,32], index: 7, kind: input, shape index: {}]   ;;  %s1566_s8 = inlined_call_operand.vmem [shape: bf16[32,32], index: 8, kind: input, shape index: {}]   ;;  %s1567_s9 = inlined_call_operand.vmem [shape: f32[1,32], index: 9, kind: input, shape index: {}]   ;;  %s1568_s10 = inlined_call_operand.hbm [shape: f32[4,1,32], index: 10, kind: output, shape index: {0}]   ;;  %s1569_s11 = inlined_call_operand.vmem [shape: f32[4,64,128], index: 11, kind: output, shape index: {1}]  }
   0x1   :  { %1570 = sst [smem:[#allocation5_spill]] %s1558_s0 }
   0x2   :  { %17 = vsyncpa [#allocation3], 0 }
   0x3   :  { %19 = vsyncpa [#allocation3 + $0x1], 0  ;;  %s1394_s17 = smov 0   ;;  %s1396_s18 = smov 0  }
   0x4   :  { %s1398_s19 = smov 0   ;;  %s1400_s20 = smov 0  }
   0x5 LB: > { %s1415_s21 = sadd.s32 4294967295, %s1328_s20   ;;  %s1060_s22 = sadd.s32 4294967294, %s1328_s20   ;;  %s1328_s20 = sphi %s1400_s20, %s1577_s20   ;;  %s1324_s19 = sphi %s1398_s19, %s1576_s19   ;;  %s1320_s18 = sphi %s1396_s18, %s1575_s18   ;;  %s1316_s17 = sphi %s1394_s17, %s1574_s17  }
   0x6   : > { %s1419_s23 = sadd.s32 1, %s1328_s20   ;;  %s257_s24 = sadd.s32 1, %s1324_s19 }
   0x7   : > { %s254_s25 = ssub.s32 %s1328_s20, %s1419_s23  ;;  %p267_p0 = scmp.ne.s32.totalorder %s1324_s19, %s1320_s18 }
   0x8   : > { %p255_p1 = scmp.eq.s32.totalorder %s254_s25, 0  ;;  %p268_p2 = scmp.eq.s32.totalorder %s1415_s21, 3 }
   0x9   : > { %p273_p3 = scmp.ne.s32.totalorder %s1320_s18, %s1316_s17  ;;  %p274_p4 = scmp.eq.s32.totalorder %s1060_s22, 3 }
   0xa   : > { %s1430_s26 = scalar_select %p255_p1, %s1324_s19, %s257_s24  }
   0xb   : > { %p1432_p5 = por %p268_p2, %p267_p0  ;;  %p1436_p6 = por %p274_p4, %p273_p3 }
   0xc   : > { %p1063_p7 = scmp.ge.s32.totalorder %s1328_s20, 1  ;;  %p361_p8 = scmp.lt.s32.totalorder %s1328_s20, 5 }
   0xe   : > { %p362_p9 = pnand %p1063_p7, %p361_p8 }
   0xf   : > { %v1252_v0 = vld [vmem:[%s1562_s4] sm:$0xff] (!%p362_p9)   ;;  %p413_p10 = scmp.lt.s32.totalorder (!%p362_p9), %s1415_s21, 3  ;;  %v1253_v1 = vld [vmem:[%s1562_s4 + $0x8] sm:$0xff] (!%p362_p9)   ;;  %s1573_s0 = sld [smem:[#allocation5_spill]] (!%p362_p9)  ;;  %vm488_vm0 = vcmask (!%p362_p9), 261120   ;;  %vm682_vm1 = vcmask (!%p362_p9), 516096  }
  0x10   : > { %365 = sbr.rel (%p362_p9) target bundleno = 929 (0x3a1), region = 60  ;;  %1135 = vmatprep.subr.bf16.mxu0 (!%p362_p9), %v1252_v0  ;;  %v1258_v6 = vld [vmem:[%s1564_s6] sm:$0xff] (!%p362_p9)   ;;  %v1259_v7 = vld [vmem:[%s1564_s6 + $0x8] sm:$0xff] (!%p362_p9)   ;;  %v1330_v41 = vmov (!%p362_p9), 0.0|0.0   ;;  %vm1331_vm2 = vmmov (!%p362_p9), 0   ;;  %v1332_v42 = vmov (!%p362_p9), 0.0  }
  0x11   : > { %1136 = vmatpush3.bf16.msra.mxu0 (!%p362_p9), %v1252_v0  ;;  %1147 = vmatprep.subr.bf16.mxu1 (!%p362_p9), %v1258_v6  ;;  %v1070_v10 = vld [vmem:[%s1563_s5] ss:$0 sm:$0xff] (!%p362_p9)  ;;  %vm689_vm3 = vcmask (!%p362_p9), 523264   ;;  %vm824_vm4 = vcmask (!%p362_p9), 253952  }
  0x12   : > { %1137 = vmatprep.subr.bf16.mxu0 (!%p362_p9), %v1253_v1  ;;  %1148 = vmatpush3.bf16.msra.mxu1 (!%p362_p9), %v1258_v6  ;;  %v1081_v43 = vld [vmem:[%s1565_s7] ss:$0 sm:$0xff] (!%p362_p9) }
  0x13   : > { %1149 = vmatprep.subr.bf16.mxu1 (!%p362_p9), %v1259_v7 }
  0x15   : > { %1138 = vmatpush3.bf16.msra.mxu0 (!%p362_p9), %v1253_v1 }
  0x16   : > { %1150 = vmatpush3.bf16.msra.mxu1 (!%p362_p9), %v1259_v7 }
  0x17   : > { %s1450_s14 = scalar_select %p413_p10, %s1415_s21, 3  ;;  %1198 = vmatprep.subr.bf16.mxu1 %v1330_v41 }
  0x19   : > { %s1102_s15 = sshll.u32 %s1450_s14, 5  ;;  %s420_s16 = scalar_lea.vmem %s1559_s1, %s1450_s14 }
  0x1a   : > { %s417_s24 = scalar_lea.vmem %s1573_s0, %s1102_s15  ;;  %v1470_v8 = vld [vmem:[%s420_s16] sm:$0x1]  ;;  %s1103_s25 = sshll.u32 %s1450_s14, 4 }
  0x1b   : > { %v1254_v2 = vld [vmem:[%s417_s24] sm:$0xff]   ;;  %v1255_v3 = vld [vmem:[%s417_s24 + $0x8] sm:$0xff]   ;;  %v1256_v4 = vld [vmem:[%s417_s24 + $0x10] sm:$0xff]   ;;  %v683_v9 = vsel %vm682_vm1, %v1470_v8, 0.0  ;;  %s425_s12 = scalar_lea.vmem %s1560_s2, %s1103_s25  ;;  %s1104_s29 = sshll.u32 %s1450_s14, 6 }
  0x1c   : > { %1139 = vmatprep.mubr.msk.bf16.mxu0 %vm488_vm0, %v1254_v2  ;;  %v1257_v5 = vld [vmem:[%s417_s24 + $0x18] sm:$0xff]   ;;  %684 = vadd.xlane.f32.xlu0 %v683_v9  ;;  %v1260_v39 = vld [vmem:[%s425_s12] sm:$0xff]   ;;  %v1261_v40 = vld [vmem:[%s425_s12 + $0x8] sm:$0xff]   ;;  %s430_s0 = scalar_lea.vmem %s1569_s11, %s1104_s29  ;;  %s404_s14 = sand.u32 1, %s1320_s18  }
  0x1d   : > { %1140 = vmatmul.mubr.msk.bf16.vlgmr.msra.gmra.mrb[0].mxu0 %vm488_vm0, %v1255_v3  ;;  %1186 = vmatprep.subr.bf16.mxu0 %v1260_v39  ;;  %s1099_s24 = sshll.u32 %s1415_s21, 4  ;;  %s405_s25 = scalar_lea.vmem [#allocation2], %s404_s14 }
  0x1e   : > { %1143 = vmatprep.mubr.msk.bf16.mxu0 %vm488_vm0, %v1256_v4  ;;  %1187 = vmatpush3.bf16.msra.mxu0 %v1260_v39  ;;  %s956_s29 = sshll.u32 %s405_s25, 4  ;;  %s1516_s12 = scalar_lea.hbm %s1568_s10, %s1099_s24  ;;  %s1518_s29 = int_to_ptr.vmem [resolvable:$true] %s956_s29 }
  0x1f   : > { %1188 = vmatprep.subr.bf16.mxu0 %v1261_v40  ;;  %s939_s21 = scalar_lea.sflag [#allocation3], %s404_s14  ;;  %s1266_s13 = scalar_lea.vmem %s1518_s29, 16 }
  0x20   : > { %p1267_p11 = scmp.ne.s32.totalorder %s1518_s29, %s1266_s13  ;;  %s1333_s15 = smov [#allocation2]  }
  0x21   : > { %s1270_s16 = sshll.u32 %s1333_s15, 4  ;;  %s1271_s16 = int_to_ptr.vmem [resolvable:$false] %s1270_s16 }
  0x22   : > { %1189 = vmatpush3.bf16.msra.mxu0 %v1261_v40  ;;  %p1268_p12 = pnand %p1267_p11, %p1432_p5  ;;  %s1272_s22 = scalar_lea.vmem %s1271_s16, 32 }
  0x23   : > { %p1273_p0 = scmp.lt.s32.totalorder %s1518_s29, %s1271_s16  ;;  %p1274_p1 = scmp.lt.s32.totalorder %s1272_s22, %s1266_s13 }
  0x24   : > { %p1269_p13 = pneg %p1268_p12 }
  0x25   : > { %1144 = vmatmul.mubr.msk.bf16.gmra.mrb[4].mxu0 %vm488_vm0, %v1257_v5  ;;  %p1275_p2 = por %p1274_p1, %p1273_p0 }
  0x27   : > { %p1276_p3 = pnand %p1275_p2, %p1269_p13 }
  0xa9   : > { %v685_v47 = vpop.xlane.xlu0 %684 }
  0xaa   : > { %v686_v53 = vadd.f32 1e-06, %v685_v47 }
  0xac   : > { %1264 = vrcp.f32 %v686_v53 }
  0xf0   : > { %v1141_v11 = vpop.f32.mrb[0].mxu0 }
  0xf1   : > { %v544_v12 = vadd.f32 %v1141_v11, %v1070_v10  ;;  %v535_v13 = vpop.f32.mrb[1].mxu0  ;;  %v1265_v11 = vpop.eup %1264 }
  0xf2   : > { %v536_v14 = vadd.f32 %v1070_v10, %v535_v13  ;;  %v1142_v15 = vpop.f32.mrb[2].mxu0  ;;  %v1262_v13 = vld [vmem:[%s1566_s8] sm:$0xff]  }
  0xf3   : > { %v547_v16 = vadd.f32 %v1142_v15, %v1070_v10  ;;  %v538_v17 = vpop.f32.mrb[3].mxu0  ;;  %v568_v19 = vmax.f32 %v544_v12, 0.0  ;;  %v688_v12 = vmul.f32 %v1265_v11, %v1470_v8  ;;  %v1092_v8 = vld [vmem:[%s1561_s3] ss:$0 sm:$0xff] }
  0xf4   : > { %v539_v18 = vadd.f32 %v1070_v10, %v538_v17  ;;  %v566_v21 = vmax.f32 %v536_v14, 0.0  ;;  %v1263_v14 = vld [vmem:[%s1566_s8 + $0x8] sm:$0xff]  }
  0xf5   : > { %v569_v20 = vmax.f32 %v547_v16, 0.0 }
  0xf6   : > { %v567_v22 = vmax.f32 %v539_v18, 0.0 }
  0xf7   : > { %v575_v23 = vpack.c.bf16 %v569_v20, %v568_v19 }
  0xf8   : > { %v1145_v24 = vpop.f32.mrb[4].mxu0  ;;  %v574_v25 = vpack.c.bf16 %v567_v22, %v566_v21 }
  0xf9   : > { %v560_v26 = vadd.f32 %v1145_v24, %v1070_v10  ;;  %v551_v27 = vpop.f32.mrb[5].mxu0 }
  0xfa   : > { %v552_v28 = vadd.f32 %v1070_v10, %v551_v27  ;;  %v1146_v29 = vpop.f32.mrb[6].mxu0  ;;  %1151 = vmatprep.mubr.msk.bf16.mxu1 %vm488_vm0, %v574_v25 }
  0xfb   : > { %v563_v30 = vadd.f32 %v1146_v29, %v1070_v10  ;;  %v554_v31 = vpop.f32.mrb[7].mxu0  ;;  %1152 = vmatmul.mubr.msk.bf16.vlgmr.msra.gmra.mrb[0].mxu1 %vm488_vm0, %v575_v23  ;;  %v572_v33 = vmax.f32 %v560_v26, 0.0 }
  0xfc   : > { %v555_v32 = vadd.f32 %v1070_v10, %v554_v31  ;;  %v570_v35 = vmax.f32 %v552_v28, 0.0 }
  0xfd   : > { %v573_v34 = vmax.f32 %v563_v30, 0.0 }
  0xfe   : > { %v571_v36 = vmax.f32 %v555_v32, 0.0 }
  0xff   : > { %v577_v37 = vpack.c.bf16 %v573_v34, %v572_v33  ;;  %v768_v34 = vld [vmem:[%s1567_s9] sm:$0x1] }
 0x100   : > { %v576_v38 = vpack.c.bf16 %v571_v36, %v570_v35 }
 0x102   : > { %1155 = vmatprep.mubr.msk.bf16.mxu1 %vm488_vm0, %v576_v38 }
 0x103   : > { %1156 = vmatmul.mubr.msk.bf16.gmra.mrb[4].mxu1 %vm488_vm0, %v577_v37 }
 0x104   : > { %1175 = vmatprep.mubr.msk.f32.mxu1 %vm1331_vm2, %v1332_v42 }
 0x1ce   : > { %v1153_v44 = vpop.f32.mrb[0].mxu1 }
 0x1cf   : > { %v651_v45 = vadd.f32 %v1153_v44, %v1081_v43  ;;  %v642_v46 = vpop.f32.mrb[1].mxu1 }
 0x1d0   : > { %v643_v48 = vadd.f32 %v1081_v43, %v642_v46  ;;  %v1154_v49 = vpop.f32.mrb[2].mxu1 }
 0x1d1   : > { %v654_v50 = vadd.f32 %v1154_v49, %v1081_v43  ;;  %v645_v51 = vpop.f32.mrb[3].mxu1  ;;  %v675_v54 = vmax.f32 %v651_v45, 0.0 }
 0x1d2   : > { %v646_v52 = vadd.f32 %v1081_v43, %v645_v51  ;;  %v673_v56 = vmax.f32 %v643_v48, 0.0 }
 0x1d3   : > { %v676_v55 = vmax.f32 %v654_v50, 0.0 }
 0x1d4   : > { %v674_v57 = vmax.f32 %v646_v52, 0.0 }
 0x1d5   : > { %v1202_v58 = vpack.c.bf16 %v676_v55, %v675_v54 }
 0x1d6   : > { %v1199_v59 = vpack.c.bf16 %v674_v57, %v673_v56  ;;  %v1157_v60 = vpop.f32.mrb[4].mxu1 }
 0x1d7   : > { %v667_v61 = vadd.f32 %v1157_v60, %v1081_v43  ;;  %v658_v62 = vpop.f32.mrb[5].mxu1 }
 0x1d8   : > { %v659_v63 = vadd.f32 %v1081_v43, %v658_v62  ;;  %v1158_v0 = vpop.f32.mrb[6].mxu1  ;;  %1200 = vmatpush3.bf16.msra.mxu1 %v1199_v59  ;;  %1190 = vmatprep.mubr.msk.bf16.mxu0 %vm488_vm0, %v1199_v59 }
 0x1d9   : > { %v670_v1 = vadd.f32 %v1158_v0, %v1081_v43  ;;  %v661_v2 = vpop.f32.mrb[7].mxu1  ;;  %1191 = vmatmul.mubr.msk.bf16.vlgmr.msra.gmra.mrb[8].mxu0 %vm488_vm0, %v1202_v58  ;;  %1201 = vmatprep.subr.bf16.mxu1 %v1330_v41  ;;  %v679_v4 = vmax.f32 %v667_v61, 0.0 }
 0x1da   : > { %v662_v3 = vadd.f32 %v1081_v43, %v661_v2  ;;  %v677_v6 = vmax.f32 %v659_v63, 0.0 }
 0x1db   : > { %v680_v5 = vmax.f32 %v670_v1, 0.0 }
 0x1dc   : > { %v678_v7 = vmax.f32 %v662_v3, 0.0  ;;  %1203 = vmatpush3.bf16.msra.mxu1 %v1202_v58 }
 0x1dd   : > { %v1208_v9 = vpack.c.bf16 %v680_v5, %v679_v4  ;;  %1204 = vmatprep.subr.bf16.mxu1 %v1330_v41 }
 0x1de   : > { %v1205_v10 = vpack.c.bf16 %v678_v7, %v677_v6 }
 0x1e0   : > { %1206 = vmatpush3.bf16.msra.mxu1 %v1205_v10  ;;  %1194 = vmatprep.mubr.msk.bf16.mxu0 %vm488_vm0, %v1205_v10 }
 0x1e1   : > { %1195 = vmatmul.mubr.msk.bf16.gmra.mrb[12].mxu0 %vm488_vm0, %v1208_v9  ;;  %1207 = vmatprep.subr.bf16.mxu1 %v1330_v41 }
 0x1e4   : > { %1209 = vmatpush3.bf16.msra.mxu1 %v1208_v9 }
 0x1e5   : > { %1178 = vmatprep.subr.bf16.mxu1 %v1332_v42 }
 0x1e7   : > { %1176 = vmatmul.mubr.msk.f32.vlgmr.msra.gmra.mrb[8].mxu1 %vm689_vm3, %v688_v12 }
 0x1e8   : > { %1182 = vmatprep.mubr.msk.bf16.mxu1 %vm1331_vm2, %v1332_v42  ;;  %1179 = vmatpush3.bf16.msra.mxu1 %v1262_v13 }
 0x1e9   : > { %1180 = vmatprep.subr.bf16.mxu1 %v1332_v42 }
 0x1ec   : > { %1181 = vmatpush3.bf16.msra.mxu1 %v1263_v14 }
 0x2ac   : > { %v1192_v15 = vpop.f32.mrb[8].mxu0 }
 0x2ad   : > { %v908_v16 = vadd.f32 %v1192_v15, %v1092_v8  ;;  %v899_v17 = vpop.f32.mrb[9].mxu0 }
 0x2ae   : > { %v900_v18 = vadd.f32 %v1092_v8, %v899_v17  ;;  %v1193_v19 = vpop.f32.mrb[10].mxu0 }
 0x2af   : > { %932 = vst [vmem:[%s430_s0 + $0x10] sm:$0xff] %v908_v16  ;;  %v911_v20 = vadd.f32 %v1193_v19, %v1092_v8  ;;  %v902_v21 = vpop.f32.mrb[11].mxu0 }
 0x2b0   : > { %930 = vst [vmem:[%s430_s0] sm:$0xff] %v900_v18  ;;  %v903_v22 = vadd.f32 %v1092_v8, %v902_v21 }
 0x2b1   : > { %933 = vst [vmem:[%s430_s0 + $0x18] sm:$0xff] %v911_v20 }
 0x2b2   : > { %931 = vst [vmem:[%s430_s0 + $0x8] sm:$0xff] %v903_v22 }
 0x2b4   : > { %v1196_v23 = vpop.f32.mrb[12].mxu0 }
 0x2b5   : > { %v924_v24 = vadd.f32 %v1196_v23, %v1092_v8  ;;  %v915_v25 = vpop.f32.mrb[13].mxu0 }
 0x2b6   : > { %v916_v26 = vadd.f32 %v1092_v8, %v915_v25  ;;  %v1197_v27 = vpop.f32.mrb[14].mxu0 }
 0x2b7   : > { %936 = vst [vmem:[%s430_s0 + $0x30] sm:$0xff] %v924_v24  ;;  %v927_v28 = vadd.f32 %v1197_v27, %v1092_v8  ;;  %v918_v29 = vpop.f32.mrb[15].mxu0 }
 0x2b8   : > { %934 = vst [vmem:[%s430_s0 + $0x20] sm:$0xff] %v916_v26  ;;  %v919_v30 = vadd.f32 %v1092_v8, %v918_v29 }
 0x2b9   : > { %937 = vst [vmem:[%s430_s0 + $0x38] sm:$0xff] %v927_v28 }
 0x2ba   : > { %935 = vst [vmem:[%s430_s0 + $0x28] sm:$0xff] %v919_v30  ;;  %v759_v31 = vpop.f32.mrb[8].mxu1 }
 0x2bb   : > { %v763_v32 = vpack.c.bf16 %v759_v31, %v759_v31  ;;  %v1177_v33 = vpop.f32.mrb[9].mxu1 }
 0x2bd   : > { %1183 = vmatmul.mubr.msk.bf16.vlgmr.msra.gmra.mrb[12].mxu1 %vm488_vm0, %v763_v32 }
 0x390   : > { %v818_v35 = vpop.f32.mrb[12].mxu1 }
 0x391   : > { %v819_v36 = vadd.f32 %v818_v35, %v768_v34  ;;  %v1184_v37 = vpop.f32.mrb[13].mxu1 }
 0x392   : > { %v821_v38 = vpop.f32.mrb[14].mxu1 }
 0x393   : > { %v1185_v39 = vpop.f32.mrb[15].mxu1  ;;  %825 = vst.msk [vmem:[%s405_s25] sm:$0x1] %vm824_vm4, %v819_v36 }
 0x394   : > { %1279 = shalt.err (!%p1276_p3)
}
 0x395   : > { %s1280_s14 = scalar_lea.hbm %s1516_s12, 16  ;;  %s1284_s30 = scalar_lea.hbm %s1568_s10, 64 }
 0x396   : > { %p1281_p4 = scmp.ne.s32.totalorder %s1516_s12, %s1280_s14  ;;  %p1285_p9 = scmp.lt.u32.totalorder %s1516_s12, %s1568_s10 }
 0x397   : > { %p1286_p10 = scmp.lt.u32.totalorder %s1284_s30, %s1280_s14  ;;  %p1288_p12 = scmp.lt.u32.totalorder %s1280_s14, %s1516_s12 }
 0x398   : > { %p1282_p7 = pnand %p1281_p4, %p1432_p5 }
 0x399   : > { %p1287_p11 = por %p1286_p10, %p1285_p9 }
 0x39a   : > { %p1283_p8 = pneg %p1282_p7 }
 0x39b   : > { %p1289_p13 = por %p1288_p12, %p1287_p11 }
 0x39d   : > { %p1290_p0 = pnand %p1289_p13, %p1283_p8 }
 0x39f   : > { %1293 = shalt.err (!%p1290_p0)
}
 0x3a0   : > { %1210 = dma.vmem_to_hbm [thread:$0]  (%p1432_p5), %s1518_s29, 16, %s1516_s12, %s939_s21  }
 0x3a1 PF: > { %p1216_p1 = scmp.ge.s32.totalorder %s1328_s20, 2  ;;  %s971_s13 = sand.u32 1, %s1316_s17  }
 0x3a2   : > { %s972_s16 = scalar_lea.sflag [#allocation3], %s971_s13 }
 0x3a3   : > { %p1213_p2 = pnand %p1216_p1, %p1436_p6 }
 0x3a5   : > { %1311 = dma.done.wait (!%p1213_p2), %s972_s16, 16  }
 0x3a6   : > { %1313 = vsyncadd (!%p1213_p2), %s972_s16, 4294967280  ;;  %p22_p3 = scmp.ge.s32.totalorder %s1419_s23, 6   ;;  %s1574_s17 = smov %s1320_s18 }
 0x3a7   : > { %s1575_s18 = smov %s1324_s19  ;;  %s1576_s19 = smov %s1430_s26 }
 0x3a8   : > { %s1577_s20 = smov %s1419_s23  ;;  %24 = sbr.rel (!%p22_p3) target bundleno = 5 (0x5), region = 113 }
 0x3af   :  { %984 = vsyncpa [#allocation3], 1 }
 0x3b0   :  { %986 = vsyncpa [#allocation3 + $0x1], 1 }

</bundles_post_ra>
